<compile_context>
chip_gen: v5e
topology: v5e:2x2
jax: 0.10.0
libtpu: 0.0.40
codegen_flags: <defaults>
</compile_context>

<pallas_src>
import functools

import jax
import jax.numpy as jnp
from jax import lax
from jax.experimental import pallas as pl
from jax.experimental.pallas import tpu as pltpu

_LANE = 128
_BN_EPS = 1e-5
_MIB = 1 << 20
_FUSE_VMEM_BUDGET = 44 * _MIB     # keep the fused stack comfortably under v7x's 64 MiB
_VMEM_LIMIT_CAP = 60 * _MIB
_PER_TAP_THRESHOLD = 256          # taps*C above which per-tap MXU accumulation is used


def _round_up(n, m):
    return ((n + m - 1) // m) * m


def _const_spec(shape):
    """Whole-array block whose index never changes across the grid.

    Single-buffered when supported: the block is only fetched once, so the second
    pipeline buffer would be pure VMEM waste (matters for the large stacked weights)."""
    idx = lambda i: (0,) * len(shape)
    try:
        return pl.BlockSpec(shape, idx, pipeline_mode=pl.Buffered(1))
    except Exception:                      # older jax without pipeline_mode / Buffered
        return pl.BlockSpec(shape, idx)


# ----------------------------------------------------------------------------
# In-kernel building blocks (pure functions on values)
# ----------------------------------------------------------------------------
def _conv_taps(w, src, t_out, taps, dilation, per_tap):
    """Dilated temporal conv of all stacked branches as MXU matmul(s).

    w:   (c_out, taps*c_in) centered taps, tap-major columns (w[o, j*c_in + c]).
    src: (c_in, W) with W >= (taps-1)*dilation + t_out.
    Returns f32 (c_out, t_out)."""
    c_in = src.shape[0]
    if per_tap:
        # K MXU pushes accumulating in f32 (in-place MRB accumulation on v7x); avoids
        # materializing the (taps*c_in, t_out) stacked operand in VMEM.
        acc = jnp.dot(w[:, :c_in], src[:, :t_out], preferred_element_type=jnp.float32)
        for j in range(1, taps):
            acc = acc + jnp.dot(w[:, j * c_in:(j + 1) * c_in],
                                src[:, j * dilation:j * dilation + t_out],
                                preferred_element_type=jnp.float32)
        return acc
    # Small contraction: one stacked matmul keeps the MXU full.
    xs = jnp.concatenate(
        [src[:, j * dilation: j * dilation + t_out] for j in range(taps)], axis=0)
    return jnp.dot(w, xs, preferred_element_type=jnp.float32)


def _layer_compute(a, w0, sc0, sh0, w1, sc1, sh1, wd, bd, *,
                   taps, dilation, t_valid, per_tap0, per_tap1):
    """One MultibranchTemporalBlock (eval mode) on a single batch element.

    a: (c_in, t_pad) activations in compute dtype; columns >= t_valid are zero (they
       double as the conv's right zero padding).  Returns f32 (c_out, t_pad) with
       columns >= t_valid forced to zero so it can be carried to the next layer."""
    c_in, t_pad = a.shape
    cdt = a.dtype
    halo = (taps - 1) * dilation // 2
    # Extended window for the first conv set (positions [-halo, ...)), rounded so the
    # hot intermediates feeding the second matmul stay lane-dense.
    t_ext = _round_up(t_pad + 2 * halo, _LANE)
    left, right = 2 * halo, t_ext - t_pad
    pieces = []
    if left:
        pieces.append(jnp.zeros((c_in, left), cdt))
    pieces.append(a)
    if right:
        pieces.append(jnp.zeros((c_in, right), cdt))
    ap = jnp.concatenate(pieces, axis=1) if len(pieces) > 1 else a   # (c_in, t_ext+2*halo)

    # ---- branch set 0 (all branches stacked over output channels): conv + BN + ReLU
    h0 = _conv_taps(w0, ap, t_ext, taps, dilation, per_tap0)
    h0 = jnp.maximum(h0 * sc0 + sh0, 0.0)
    # Zero everything outside the true sequence: exactly the zero padding the second
    # conv set expects (PyTorch conv padding + symmetric chomp semantics).
    col = lax.broadcasted_iota(jnp.int32, (1, t_ext), 1)
    h0 = jnp.where((col >= halo) & (col < halo + t_valid), h0, 0.0).astype(cdt)

    # ---- branch set 1: conv + BN + ReLU
    h1 = _conv_taps(w1, h0, t_pad, taps, dilation, per_tap1)
    h1 = jnp.maximum(h1 * sc1 + sh1, 0.0)

    # ---- residual (optional 1x1 downsample) + final ReLU
    if wd is not None:
        res = jnp.dot(wd, a, preferred_element_type=jnp.float32) + bd
    else:
        res = a.astype(jnp.float32)
    out = jnp.maximum(h1 + res, 0.0)
    # Keep the lane-padded tail exactly zero so the padded layout can be carried to the
    # next layer (and to HBM) without any wrapper-side pad/slice round trip.
    tcol = lax.broadcasted_iota(jnp.int32, (1, t_pad), 1)
    return jnp.where(tcol < t_valid, out, 0.0)


# ----------------------------------------------------------------------------
# Kernels
# ----------------------------------------------------------------------------
def _mbtcn_stack_kernel(x_ref, *refs, metas, t_valid):
    """Entire layer stack fused: activations stay in VMEM between layers."""
    o_ref = refs[-1]
    wrefs = refs[:-1]
    a = x_ref[0]                                  # (C0, t_pad), compute dtype
    cdt = a.dtype
    pos = 0
    for m in metas:
        n = 8 if m["has_ds"] else 6
        grp = wrefs[pos:pos + n]
        pos += n
        w0, sc0, sh0, w1, sc1, sh1 = (r[...] for r in grp[:6])
        wd = grp[6][...] if m["has_ds"] else None
        bd = grp[7][...] if m["has_ds"] else None
        out = _layer_compute(a, w0, sc0, sh0, w1, sc1, sh1, wd, bd,
                             taps=m["taps"], dilation=m["dilation"], t_valid=t_valid,
                             per_tap0=m["per_tap0"], per_tap1=m["per_tap1"])
        a = out.astype(cdt)
    o_ref[0] = a.astype(o_ref.dtype)


def _mbt_block_kernel(x_ref, w0_ref, sc0_ref, sh0_ref, w1_ref, sc1_ref, sh1_ref, *rest,
                      taps, dilation, t_valid, has_ds, per_tap0, per_tap1):
    """Single-layer fallback (used when the fused stack would not fit VMEM)."""
    if has_ds:
        wd_ref, bd_ref, o_ref = rest
        wd, bd = wd_ref[...], bd_ref[...]
    else:
        (o_ref,) = rest
        wd = bd = None
    out = _layer_compute(x_ref[0], w0_ref[...], sc0_ref[...], sh0_ref[...],
                         w1_ref[...], sc1_ref[...], sh1_ref[...], wd, bd,
                         taps=taps, dilation=dilation, t_valid=t_valid,
                         per_tap0=per_tap0, per_tap1=per_tap1)
    o_ref[0] = out.astype(o_ref.dtype)


# ----------------------------------------------------------------------------
# Host-side parameter packing (stack branches, center-pad taps, fold bias into BN)
# ----------------------------------------------------------------------------
def _pack_branch_set(branches, kmax):
    ws, scs, shs = [], [], []
    for p in branches:
        _, _, k = p["w"].shape
        assert k % 2 == 1, "symmetric chomp requires odd kernel sizes"
        off = (kmax - k) // 2
        assert 2 * off == kmax - k, "kernel sizes must share parity for shared padding"
        ws.append(jnp.pad(p["w"], ((0, 0), (0, 0), (off, kmax - k - off))))
        scs.append(p["scale"])
        shs.append(p["shift"] + p["b"] * p["scale"])     # fold conv bias into BN shift
    w = jnp.concatenate(ws, axis=0)                      # (C_out_total, C_in, kmax)
    # tap-major contraction columns: w2[o, j*C_in + c] = w[o, c, j]
    w2 = jnp.transpose(w, (0, 2, 1)).reshape(w.shape[0], kmax * w.shape[1])
    return w2, jnp.concatenate(scs)[:, None], jnp.concatenate(shs)[:, None]


def _pack_layer(layer, kmax):
    w0, sc0, sh0 = _pack_branch_set(layer["cbcr0"], kmax)
    w1, sc1, sh1 = _pack_branch_set(layer["cbcr1"], kmax)
    packed = {"w0": w0, "scale0": sc0, "shift0": sh0,
              "w1": w1, "scale1": sc1, "shift1": sh1, "wd": None, "bd": None}
    if layer["downsample"] is not None:
        packed["wd"] = layer["downsample"]["w"][:, :, 0]      # (C_out, C_in)
        packed["bd"] = layer["downsample"]["b"][:, None]      # (C_out, 1)
    return packed


def _layer_interm_bytes(c_in, c_out, t_pad, taps, dilation, csize, per_tap0, per_tap1):
    halo = (taps - 1) * dilation // 2
    t_ext = _round_up(t_pad + 2 * halo, _LANE)
    b = (t_ext + 2 * halo) * c_in * csize            # halo-padded input copy
    b += t_ext * c_out * (4 + csize)                 # h0 (f32) + cast copy
    b += t_pad * c_out * 4 * 3                       # h1, residual, output (f32)
    if not per_tap0:
        b += taps * c_in * t_ext * csize             # stacked MXU operand, set 0
    if not per_tap1:
        b += taps * c_out * t_pad * csize            # stacked MXU operand, set 1
    return b


def _vmem_limit(est_bytes):
    return int(min(max(2 * est_bytes, 32 * _MIB), _VMEM_LIMIT_CAP))


# ----------------------------------------------------------------------------
# Forward pass (Pallas)
# ----------------------------------------------------------------------------
def mbtcn_forward(x, params, kernel_sizes, *, compute_dtype=None, fuse_layers=True,
                  per_tap_threshold=_PER_TAP_THRESHOLD):
    """MultibranchTemporalConvNet forward (eval mode)."""
    kmax = max(kernel_sizes)
    B, c0, T = x.shape
    t_pad = _round_up(T, _LANE)              # lane-dense time axis, carried across layers
    cdt = x.dtype if compute_dtype is None else jnp.dtype(compute_dtype)
    csize = jnp.dtype(cdt).itemsize

    packed = [_pack_layer(layer, kmax) for layer in params]

    metas, total_wbytes, max_ibytes, c_in = [], 0, 0, c0
    for layer, pk in zip(params, packed):
        c_out = pk["w0"].shape[0]
        d = layer["dilation"]
        has_ds = pk["wd"] is not None
        if not has_ds:
            assert c_in == c_out, "identity residual requires matching channel counts"
        per_tap0 = kmax * c_in >= per_tap_threshold
        per_tap1 = kmax * c_out >= per_tap_threshold
        wbytes = (pk["w0"].size + pk["w1"].size) * csize + 4 * (
            pk["scale0"].size + pk["shift0"].size + pk["scale1"].size + pk["shift1"].size)
        if has_ds:
            wbytes += pk["wd"].size * csize + 4 * pk["bd"].size
        ibytes = _layer_interm_bytes(c_in, c_out, t_pad, kmax, d, csize, per_tap0, per_tap1)
        metas.append(dict(taps=kmax, dilation=d, has_ds=has_ds, c_in=c_in, c_out=c_out,
                          per_tap0=per_tap0, per_tap1=per_tap1,
                          wbytes=wbytes, ibytes=ibytes))
        total_wbytes += wbytes
        max_ibytes = max(max_ibytes, ibytes)
        c_in = c_out

    # Lane-pad the time axis ONCE at the network entry; the zero tail doubles as the
    # convs' right zero-padding and is preserved by every layer's epilogue mask, so no
    # per-layer HBM pad/slice round trips are needed.
    xp = jnp.pad(x, ((0, 0), (0, 0), (0, t_pad - T))).astype(cdt)

    def layer_args(pk):
        args = [pk["w0"].astype(cdt), pk["scale0"], pk["shift0"],
                pk["w1"].astype(cdt), pk["scale1"], pk["shift1"]]
        if pk["wd"] is not None:
            args += [pk["wd"].astype(cdt), pk["bd"]]
        return args

    c_last = metas[-1]["c_out"]
    act_bytes = 2 * (c0 + c_last) * t_pad * csize            # double-buffered in/out blocks
    est_fused = act_bytes + total_wbytes + int(1.5 * max_ibytes)

    # TODO(synk): for very long sequences add a time-tile grid axis with halo overlap
    # (manual DMA) so the (C, T) blocks stay bounded; at lipreading lengths (T<=~160)
    # a single lane tile already covers the sequence.
    if fuse_layers and est_fused <= _FUSE_VMEM_BUDGET:
        # Whole network in ONE pallas_call: activations never touch HBM between layers.
        args = [xp]
        in_specs = [pl.BlockSpec((1, c0, t_pad), lambda i: (i, 0, 0))]
        for pk in packed:
            la = layer_args(pk)
            args += la
            in_specs += [_const_spec(a.shape) for a in la]
        kern = functools.partial(_mbtcn_stack_kernel, metas=tuple(metas), t_valid=T)
        out = pl.pallas_call(
            kern,
            out_shape=jax.ShapeDtypeStruct((B, c_last, t_pad), cdt),
            grid=(B,),
            in_specs=in_specs,
            out_specs=pl.BlockSpec((1, c_last, t_pad), lambda i: (i, 0, 0)),
            compiler_params=pltpu.CompilerParams(
                dimension_semantics=("parallel",),
                vmem_limit_bytes=_vmem_limit(est_fused)),
        )(*args)
    else:
        # Per-layer fused calls (e.g. when the full weight stack would blow v7x VMEM);
        # the lane-padded activation layout is still carried between layers, so the only
        # inter-layer HBM traffic is the activation itself (in compute dtype).
        # TODO(synk): on v7x, stream per-layer weights with manual DMA inside a single
        # call instead of one pallas_call per layer.
        out = xp
        for m, pk in zip(metas, packed):
            la = layer_args(pk)
            est = 2 * (m["c_in"] + m["c_out"]) * t_pad * csize + m["wbytes"] + m["ibytes"]
            ci, co = m["c_in"], m["c_out"]
            kern = functools.partial(
                _mbt_block_kernel, taps=m["taps"], dilation=m["dilation"], t_valid=T,
                has_ds=m["has_ds"], per_tap0=m["per_tap0"], per_tap1=m["per_tap1"])
            out = pl.pallas_call(
                kern,
                out_shape=jax.ShapeDtypeStruct((B, co, t_pad), cdt),
                grid=(B,),
                in_specs=[pl.BlockSpec((1, ci, t_pad), lambda i: (i, 0, 0))]
                         + [_const_spec(a.shape) for a in la],
                out_specs=pl.BlockSpec((1, co, t_pad), lambda i: (i, 0, 0)),
                compiler_params=pltpu.CompilerParams(
                    dimension_semantics=("parallel",),
                    vmem_limit_bytes=_vmem_limit(est)),
            )(out, *la)

    return out[:, :, :T]


# ----------------------------------------------------------------------------
# Parameter construction (deterministic synthetic init, eval-mode BatchNorm)
# ----------------------------------------------------------------------------
def _make_cbcr(keys, c_in, c_out, ksize):
    kw, kb, kg, kbeta, km, kv = keys
    w = 0.1 * jax.random.normal(kw, (c_out, c_in, ksize), jnp.float32)   # torch (O, I, K)
    b = 0.1 * jax.random.normal(kb, (c_out,), jnp.float32)
    gamma = 1.0 + 0.1 * jax.random.normal(kg, (c_out,), jnp.float32)
    beta = 0.1 * jax.random.normal(kbeta, (c_out,), jnp.float32)
    mean = 0.1 * jax.random.normal(km, (c_out,), jnp.float32)
    var = jax.random.uniform(kv, (c_out,), jnp.float32, 0.5, 1.5)
    scale = gamma / jnp.sqrt(var + _BN_EPS)
    shift = beta - mean * scale
    return {"w": w, "b": b, "scale": scale, "shift": shift}


def init_params(key, num_inputs, num_channels, kernel_sizes):
    num_k = len(kernel_sizes)
    layers = []
    for i, out_ch in enumerate(num_channels):
        in_ch = num_inputs if i == 0 else num_channels[i - 1]
        out_branch = out_ch // num_k
        assert out_ch % num_k == 0
        layer = {"dilation": 2 ** i, "cbcr0": [], "cbcr1": [], "downsample": None}
        for k in kernel_sizes:
            key, *ks = jax.random.split(key, 7)
            layer["cbcr0"].append(_make_cbcr(ks, in_ch, out_branch, k))
        for k in kernel_sizes:
            key, *ks = jax.random.split(key, 7)
            layer["cbcr1"].append(_make_cbcr(ks, out_ch, out_branch, k))
        if in_ch // num_k != out_ch:     # same condition as the PyTorch module
            key, kw, kb = jax.random.split(key, 3)
            layer["downsample"] = {
                "w": 0.1 * jax.random.normal(kw, (out_ch, in_ch, 1), jnp.float32),
                "b": 0.1 * jax.random.normal(kb, (out_ch,), jnp.float32),
            }
        layers.append(layer)
    return layers


# ----------------------------------------------------------------------------
# Pure-JAX reference (for correctness check)
# ----------------------------------------------------------------------------
def _ref_cbcr(x, p, dilation, apply_relu=True, use_bn=True):
    K = p["w"].shape[-1]
    pad_half = (K - 1) * dilation // 2
    y = lax.conv_general_dilated(x, p["w"], window_strides=(1,),
                                 padding=[(pad_half, pad_half)],
                                 rhs_dilation=(dilation,),
                                 dimension_numbers=("NCH", "OIH", "NCH"),
                                 precision=lax.Precision.HIGHEST)
    y = y + p["b"][None, :, None]
    if use_bn:
        y = y * p["scale"][None, :, None] + p["shift"][None, :, None]
    return jnp.maximum(y, 0.0) if apply_relu else y


def mbtcn_ref(x, params, kernel_sizes):
    for layer in params:
        d = layer["dilation"]
        out0 = jnp.concatenate(
            [_ref_cbcr(x, layer["cbcr0"][k], d) for k in range(len(kernel_sizes))], axis=1)
        out1 = jnp.concatenate(
            [_ref_cbcr(out0, layer["cbcr1"][k], d) for k in range(len(kernel_sizes))], axis=1)
        if layer["downsample"] is not None:
            res = _ref_cbcr(x, layer["downsample"], 1, apply_relu=False, use_bn=False)
        else:
            res = x
        x = jnp.maximum(out1 + res, 0.0)
    return x


# ----------------------------------------------------------------------------
if __name__ == "__main__":
    key = jax.random.PRNGKey(0)
    kx, kp, kx2, kp2 = jax.random.split(key, 4)

    # MultibranchTemporalConvNet(num_inputs=8, num_channels=[16, 16],
    #                            tcn_options={'kernel_size': [3, 5]},
    #                            dropout=0.2, relu_type='relu', dwpw=False), eval mode.
    B, C_in, T = 2, 8, 16
    num_channels = [16, 16]
    kernel_sizes = [3, 5]

    x = jax.random.normal(kx, (B, C_in, T), jnp.float32)
    params = init_params(kp, C_in, num_channels, kernel_sizes)
    ref = mbtcn_ref(x, params, kernel_sizes)

    # 1) fused whole-stack kernel, f32
    out = jax.block_until_ready(mbtcn_forward(x, params, kernel_sizes))
    assert out.shape == (B, num_channels[-1], T)
    assert bool(jnp.allclose(out, ref, atol=3e-3, rtol=3e-3)), "fused f32 mismatch"

    # 2) per-layer fallback path (carried lane-padded layout), f32
    out_pl = jax.block_until_ready(
        mbtcn_forward(x, params, kernel_sizes, fuse_layers=False))
    assert bool(jnp.allclose(out_pl, ref, atol=3e-3, rtol=3e-3)), "per-layer f32 mismatch"

    # 3) per-tap MXU accumulation path (selected automatically when taps*C is large)
    out_pt = jax.block_until_ready(
        mbtcn_forward(x, params, kernel_sizes, per_tap_threshold=1))
    assert bool(jnp.allclose(out_pt, ref, atol=3e-3, rtol=3e-3)), "per-tap f32 mismatch"

    # 4) single-branch config exercising the identity-residual path
    x_id = jax.random.normal(kx2, (B, 16, T), jnp.float32)
    params_id = init_params(kp2, 16, [16, 16], [3])
    ref_id = mbtcn_ref(x_id, params_id, [3])
    out_id = jax.block_until_ready(mbtcn_forward(x_id, params_id, [3]))
    assert bool(jnp.allclose(out_id, ref_id, atol=3e-3, rtol=3e-3)), "identity-res mismatch"

    # 5) bf16 end-to-end activations/weights (f32 MXU accumulation + f32 epilogue)
    out_bf16 = jax.block_until_ready(
        mbtcn_forward(x, params, kernel_sizes, compute_dtype=jnp.bfloat16))
    assert out_bf16.shape == (B, num_channels[-1], T)
    assert out_bf16.dtype == jnp.bfloat16
    assert bool(jnp.all(jnp.isfinite(out_bf16.astype(jnp.float32))))

    print("KERNEL_OK")
</pallas_src>

<mosaic_0001>
module attributes {stable_mosaic.version = 11 : i64} {
  func.func @_mbtcn_stack_kernel(%arg0: i32, %arg1: memref<1x8x128xf32, #tpu.memory_space<vmem>>, %arg2: memref<16x40xf32, #tpu.memory_space<vmem>>, %arg3: memref<16x1xf32, #tpu.memory_space<vmem>>, %arg4: memref<16x1xf32, #tpu.memory_space<vmem>>, %arg5: memref<16x80xf32, #tpu.memory_space<vmem>>, %arg6: memref<16x1xf32, #tpu.memory_space<vmem>>, %arg7: memref<16x1xf32, #tpu.memory_space<vmem>>, %arg8: memref<16x8xf32, #tpu.memory_space<vmem>>, %arg9: memref<16x1xf32, #tpu.memory_space<vmem>>, %arg10: memref<16x80xf32, #tpu.memory_space<vmem>>, %arg11: memref<16x1xf32, #tpu.memory_space<vmem>>, %arg12: memref<16x1xf32, #tpu.memory_space<vmem>>, %arg13: memref<16x80xf32, #tpu.memory_space<vmem>>, %arg14: memref<16x1xf32, #tpu.memory_space<vmem>>, %arg15: memref<16x1xf32, #tpu.memory_space<vmem>>, %arg16: memref<16x16xf32, #tpu.memory_space<vmem>>, %arg17: memref<16x1xf32, #tpu.memory_space<vmem>>, %arg18: memref<1x16x128xf32, #tpu.memory_space<vmem>>) attributes {dimension_semantics = [#tpu.dimension_semantics<parallel>], iteration_bounds = array<i64: 2>, scalar_prefetch = 0 : i64, scratch_operands = 0 : i64, tpu.core_type = #tpu.core_type<tc>, window_params = [{transform_indices = @transform_0, window_bounds = array<i64: 1, 8, 128>}, {pipeline_mode = #tpu.pipeline_mode<synchronous>, transform_indices = @transform_1, window_bounds = array<i64: 16, 40>}, {pipeline_mode = #tpu.pipeline_mode<synchronous>, transform_indices = @transform_2, window_bounds = array<i64: 16, 1>}, {pipeline_mode = #tpu.pipeline_mode<synchronous>, transform_indices = @transform_3, window_bounds = array<i64: 16, 1>}, {pipeline_mode = #tpu.pipeline_mode<synchronous>, transform_indices = @transform_4, window_bounds = array<i64: 16, 80>}, {pipeline_mode = #tpu.pipeline_mode<synchronous>, transform_indices = @transform_5, window_bounds = array<i64: 16, 1>}, {pipeline_mode = #tpu.pipeline_mode<synchronous>, transform_indices = @transform_6, window_bounds = array<i64: 16, 1>}, {pipeline_mode = #tpu.pipeline_mode<synchronous>, transform_indices = @transform_7, window_bounds = array<i64: 16, 8>}, {pipeline_mode = #tpu.pipeline_mode<synchronous>, transform_indices = @transform_8, window_bounds = array<i64: 16, 1>}, {pipeline_mode = #tpu.pipeline_mode<synchronous>, transform_indices = @transform_9, window_bounds = array<i64: 16, 80>}, {pipeline_mode = #tpu.pipeline_mode<synchronous>, transform_indices = @transform_10, window_bounds = array<i64: 16, 1>}, {pipeline_mode = #tpu.pipeline_mode<synchronous>, transform_indices = @transform_11, window_bounds = array<i64: 16, 1>}, {pipeline_mode = #tpu.pipeline_mode<synchronous>, transform_indices = @transform_12, window_bounds = array<i64: 16, 80>}, {pipeline_mode = #tpu.pipeline_mode<synchronous>, transform_indices = @transform_13, window_bounds = array<i64: 16, 1>}, {pipeline_mode = #tpu.pipeline_mode<synchronous>, transform_indices = @transform_14, window_bounds = array<i64: 16, 1>}, {pipeline_mode = #tpu.pipeline_mode<synchronous>, transform_indices = @transform_15, window_bounds = array<i64: 16, 16>}, {pipeline_mode = #tpu.pipeline_mode<synchronous>, transform_indices = @transform_16, window_bounds = array<i64: 16, 1>}, {transform_indices = @transform_17, window_bounds = array<i64: 1, 16, 128>}]} {
    %c0 = arith.constant 0 : index
    %c0_0 = arith.constant 0 : index
    %c0_1 = arith.constant 0 : index
    %0 = vector.load %arg1[%c0, %c0_0, %c0_1] : memref<1x8x128xf32, #tpu.memory_space<vmem>>, vector<1x8x128xf32>
    %1 = vector.shape_cast %0 : vector<1x8x128xf32> to vector<8x128xf32>
    %c0_2 = arith.constant 0 : index
    %c0_3 = arith.constant 0 : index
    %2 = vector.load %arg2[%c0_2, %c0_3] : memref<16x40xf32, #tpu.memory_space<vmem>>, vector<16x40xf32>
    %c0_4 = arith.constant 0 : index
    %c0_5 = arith.constant 0 : index
    %3 = vector.load %arg3[%c0_4, %c0_5] : memref<16x1xf32, #tpu.memory_space<vmem>>, vector<16x1xf32>
    %c0_6 = arith.constant 0 : index
    %c0_7 = arith.constant 0 : index
    %4 = vector.load %arg4[%c0_6, %c0_7] : memref<16x1xf32, #tpu.memory_space<vmem>>, vector<16x1xf32>
    %c0_8 = arith.constant 0 : index
    %c0_9 = arith.constant 0 : index
    %5 = vector.load %arg5[%c0_8, %c0_9] : memref<16x80xf32, #tpu.memory_space<vmem>>, vector<16x80xf32>
    %c0_10 = arith.constant 0 : index
    %c0_11 = arith.constant 0 : index
    %6 = vector.load %arg6[%c0_10, %c0_11] : memref<16x1xf32, #tpu.memory_space<vmem>>, vector<16x1xf32>
    %c0_12 = arith.constant 0 : index
    %c0_13 = arith.constant 0 : index
    %7 = vector.load %arg7[%c0_12, %c0_13] : memref<16x1xf32, #tpu.memory_space<vmem>>, vector<16x1xf32>
    %c0_14 = arith.constant 0 : index
    %c0_15 = arith.constant 0 : index
    %8 = vector.load %arg8[%c0_14, %c0_15] : memref<16x8xf32, #tpu.memory_space<vmem>>, vector<16x8xf32>
    %c0_16 = arith.constant 0 : index
    %c0_17 = arith.constant 0 : index
    %9 = vector.load %arg9[%c0_16, %c0_17] : memref<16x1xf32, #tpu.memory_space<vmem>>, vector<16x1xf32>
    %cst = arith.constant 0.000000e+00 : f32
    %10 = vector.broadcast %cst : f32 to vector<8x4xf32>
    %cst_18 = arith.constant 0.000000e+00 : f32
    %11 = vector.broadcast %cst_18 : f32 to vector<8x128xf32>
    %12 = tpu.concatenate %10, %1, %11 in 1 : vector<8x4xf32>, vector<8x128xf32>, vector<8x128xf32> -> vector<8x260xf32>
    %13 = vector.extract_strided_slice %12 {offsets = [0, 0], sizes = [8, 256], strides = [1, 1]} : vector<8x260xf32> to vector<8x256xf32>
    %14 = vector.extract_strided_slice %12 {offsets = [0, 1], sizes = [8, 256], strides = [1, 1]} : vector<8x260xf32> to vector<8x256xf32>
    %15 = vector.extract_strided_slice %12 {offsets = [0, 2], sizes = [8, 256], strides = [1, 1]} : vector<8x260xf32> to vector<8x256xf32>
    %16 = vector.extract_strided_slice %12 {offsets = [0, 3], sizes = [8, 256], strides = [1, 1]} : vector<8x260xf32> to vector<8x256xf32>
    %17 = vector.extract_strided_slice %12 {offsets = [0, 4], sizes = [8, 256], strides = [1, 1]} : vector<8x260xf32> to vector<8x256xf32>
    %18 = tpu.concatenate %13, %14, %15, %16, %17 in 0 : vector<8x256xf32>, vector<8x256xf32>, vector<8x256xf32>, vector<8x256xf32>, vector<8x256xf32> -> vector<40x256xf32>
    %cst_19 = arith.constant dense<0.000000e+00> : vector<16x256xf32>
    %19 = tpu.matmul %2, %18, %cst_19 {dimension_numbers = #tpu.dot_dimension_numbers<[1], [0], [0], [1], [0, 0, 1, 1], [], []>} : vector<16x40xf32>, vector<40x256xf32>, vector<16x256xf32> -> vector<16x256xf32>
    %20 = vector.broadcast %3 : vector<16x1xf32> to vector<16x256xf32>
    %21 = arith.mulf %19, %20 : vector<16x256xf32>
    %22 = vector.broadcast %4 : vector<16x1xf32> to vector<16x256xf32>
    %23 = arith.addf %21, %22 : vector<16x256xf32>
    %cst_20 = arith.constant 0.000000e+00 : f32
    %24 = vector.broadcast %cst_20 : f32 to vector<16x256xf32>
    %25 = arith.maximumf %23, %24 : vector<16x256xf32>
    %26 = tpu.iota {dimensions = array<i32: 1>} : vector<1x256xi32>
    %c2_i32 = arith.constant 2 : i32
    %27 = vector.broadcast %c2_i32 : i32 to vector<1x256xi32>
    %28 = arith.cmpi sge, %26, %27 : vector<1x256xi32>
    %c18_i32 = arith.constant 18 : i32
    %29 = vector.broadcast %c18_i32 : i32 to vector<1x256xi32>
    %30 = arith.cmpi slt, %26, %29 : vector<1x256xi32>
    %31 = arith.andi %28, %30 : vector<1x256xi1>
    %cst_21 = arith.constant 0.000000e+00 : f32
    %32 = vector.shape_cast %31 : vector<1x256xi1> to vector<1x256xi1>
    %33 = vector.broadcast %32 : vector<1x256xi1> to vector<16x256xi1>
    %34 = vector.broadcast %cst_21 : f32 to vector<16x256xf32>
    %35 = arith.select %33, %25, %34 : vector<16x256xi1>, vector<16x256xf32>
    %36 = vector.extract_strided_slice %35 {offsets = [0, 0], sizes = [16, 128], strides = [1, 1]} : vector<16x256xf32> to vector<16x128xf32>
    %37 = vector.extract_strided_slice %35 {offsets = [0, 1], sizes = [16, 128], strides = [1, 1]} : vector<16x256xf32> to vector<16x128xf32>
    %38 = vector.extract_strided_slice %35 {offsets = [0, 2], sizes = [16, 128], strides = [1, 1]} : vector<16x256xf32> to vector<16x128xf32>
    %39 = vector.extract_strided_slice %35 {offsets = [0, 3], sizes = [16, 128], strides = [1, 1]} : vector<16x256xf32> to vector<16x128xf32>
    %40 = vector.extract_strided_slice %35 {offsets = [0, 4], sizes = [16, 128], strides = [1, 1]} : vector<16x256xf32> to vector<16x128xf32>
    %41 = tpu.concatenate %36, %37, %38, %39, %40 in 0 : vector<16x128xf32>, vector<16x128xf32>, vector<16x128xf32>, vector<16x128xf32>, vector<16x128xf32> -> vector<80x128xf32>
    %cst_22 = arith.constant dense<0.000000e+00> : vector<16x128xf32>
    %42 = tpu.matmul %5, %41, %cst_22 {dimension_numbers = #tpu.dot_dimension_numbers<[1], [0], [0], [1], [0, 0, 1, 1], [], []>} : vector<16x80xf32>, vector<80x128xf32>, vector<16x128xf32> -> vector<16x128xf32>
    %43 = vector.broadcast %6 : vector<16x1xf32> to vector<16x128xf32>
    %44 = arith.mulf %42, %43 : vector<16x128xf32>
    %45 = vector.broadcast %7 : vector<16x1xf32> to vector<16x128xf32>
    %46 = arith.addf %44, %45 : vector<16x128xf32>
    %cst_23 = arith.constant 0.000000e+00 : f32
    %47 = vector.broadcast %cst_23 : f32 to vector<16x128xf32>
    %48 = arith.maximumf %46, %47 : vector<16x128xf32>
    %cst_24 = arith.constant dense<0.000000e+00> : vector<16x128xf32>
    %49 = tpu.matmul %8, %1, %cst_24 {dimension_numbers = #tpu.dot_dimension_numbers<[1], [0], [0], [1], [0, 0, 1, 1], [], []>} : vector<16x8xf32>, vector<8x128xf32>, vector<16x128xf32> -> vector<16x128xf32>
    %50 = vector.broadcast %9 : vector<16x1xf32> to vector<16x128xf32>
    %51 = arith.addf %49, %50 : vector<16x128xf32>
    %52 = arith.addf %48, %51 : vector<16x128xf32>
    %cst_25 = arith.constant 0.000000e+00 : f32
    %53 = vector.broadcast %cst_25 : f32 to vector<16x128xf32>
    %54 = arith.maximumf %52, %53 : vector<16x128xf32>
    %55 = tpu.iota {dimensions = array<i32: 1>} : vector<1x128xi32>
    %c16_i32 = arith.constant 16 : i32
    %56 = vector.broadcast %c16_i32 : i32 to vector<1x128xi32>
    %57 = arith.cmpi slt, %55, %56 : vector<1x128xi32>
    %cst_26 = arith.constant 0.000000e+00 : f32
    %58 = vector.shape_cast %57 : vector<1x128xi1> to vector<1x128xi1>
    %59 = vector.broadcast %58 : vector<1x128xi1> to vector<16x128xi1>
    %60 = vector.broadcast %cst_26 : f32 to vector<16x128xf32>
    %61 = arith.select %59, %54, %60 : vector<16x128xi1>, vector<16x128xf32>
    %c0_27 = arith.constant 0 : index
    %c0_28 = arith.constant 0 : index
    %62 = vector.load %arg10[%c0_27, %c0_28] : memref<16x80xf32, #tpu.memory_space<vmem>>, vector<16x80xf32>
    %c0_29 = arith.constant 0 : index
    %c0_30 = arith.constant 0 : index
    %63 = vector.load %arg11[%c0_29, %c0_30] : memref<16x1xf32, #tpu.memory_space<vmem>>, vector<16x1xf32>
    %c0_31 = arith.constant 0 : index
    %c0_32 = arith.constant 0 : index
    %64 = vector.load %arg12[%c0_31, %c0_32] : memref<16x1xf32, #tpu.memory_space<vmem>>, vector<16x1xf32>
    %c0_33 = arith.constant 0 : index
    %c0_34 = arith.constant 0 : index
    %65 = vector.load %arg13[%c0_33, %c0_34] : memref<16x80xf32, #tpu.memory_space<vmem>>, vector<16x80xf32>
    %c0_35 = arith.constant 0 : index
    %c0_36 = arith.constant 0 : index
    %66 = vector.load %arg14[%c0_35, %c0_36] : memref<16x1xf32, #tpu.memory_space<vmem>>, vector<16x1xf32>
    %c0_37 = arith.constant 0 : index
    %c0_38 = arith.constant 0 : index
    %67 = vector.load %arg15[%c0_37, %c0_38] : memref<16x1xf32, #tpu.memory_space<vmem>>, vector<16x1xf32>
    %c0_39 = arith.constant 0 : index
    %c0_40 = arith.constant 0 : index
    %68 = vector.load %arg16[%c0_39, %c0_40] : memref<16x16xf32, #tpu.memory_space<vmem>>, vector<16x16xf32>
    %c0_41 = arith.constant 0 : index
    %c0_42 = arith.constant 0 : index
    %69 = vector.load %arg17[%c0_41, %c0_42] : memref<16x1xf32, #tpu.memory_space<vmem>>, vector<16x1xf32>
    %cst_43 = arith.constant 0.000000e+00 : f32
    %70 = vector.broadcast %cst_43 : f32 to vector<16x8xf32>
    %cst_44 = arith.constant 0.000000e+00 : f32
    %71 = vector.broadcast %cst_44 : f32 to vector<16x128xf32>
    %72 = tpu.concatenate %70, %61, %71 in 1 : vector<16x8xf32>, vector<16x128xf32>, vector<16x128xf32> -> vector<16x264xf32>
    %73 = vector.extract_strided_slice %72 {offsets = [0, 0], sizes = [16, 256], strides = [1, 1]} : vector<16x264xf32> to vector<16x256xf32>
    %74 = vector.extract_strided_slice %72 {offsets = [0, 2], sizes = [16, 256], strides = [1, 1]} : vector<16x264xf32> to vector<16x256xf32>
    %75 = vector.extract_strided_slice %72 {offsets = [0, 4], sizes = [16, 256], strides = [1, 1]} : vector<16x264xf32> to vector<16x256xf32>
    %76 = vector.extract_strided_slice %72 {offsets = [0, 6], sizes = [16, 256], strides = [1, 1]} : vector<16x264xf32> to vector<16x256xf32>
    %77 = vector.extract_strided_slice %72 {offsets = [0, 8], sizes = [16, 256], strides = [1, 1]} : vector<16x264xf32> to vector<16x256xf32>
    %78 = tpu.concatenate %73, %74, %75, %76, %77 in 0 : vector<16x256xf32>, vector<16x256xf32>, vector<16x256xf32>, vector<16x256xf32>, vector<16x256xf32> -> vector<80x256xf32>
    %cst_45 = arith.constant dense<0.000000e+00> : vector<16x256xf32>
    %79 = tpu.matmul %62, %78, %cst_45 {dimension_numbers = #tpu.dot_dimension_numbers<[1], [0], [0], [1], [0, 0, 1, 1], [], []>} : vector<16x80xf32>, vector<80x256xf32>, vector<16x256xf32> -> vector<16x256xf32>
    %80 = vector.broadcast %63 : vector<16x1xf32> to vector<16x256xf32>
    %81 = arith.mulf %79, %80 : vector<16x256xf32>
    %82 = vector.broadcast %64 : vector<16x1xf32> to vector<16x256xf32>
    %83 = arith.addf %81, %82 : vector<16x256xf32>
    %cst_46 = arith.constant 0.000000e+00 : f32
    %84 = vector.broadcast %cst_46 : f32 to vector<16x256xf32>
    %85 = arith.maximumf %83, %84 : vector<16x256xf32>
    %86 = tpu.iota {dimensions = array<i32: 1>} : vector<1x256xi32>
    %c4_i32 = arith.constant 4 : i32
    %87 = vector.broadcast %c4_i32 : i32 to vector<1x256xi32>
    %88 = arith.cmpi sge, %86, %87 : vector<1x256xi32>
    %c20_i32 = arith.constant 20 : i32
    %89 = vector.broadcast %c20_i32 : i32 to vector<1x256xi32>
    %90 = arith.cmpi slt, %86, %89 : vector<1x256xi32>
    %91 = arith.andi %88, %90 : vector<1x256xi1>
    %cst_47 = arith.constant 0.000000e+00 : f32
    %92 = vector.shape_cast %91 : vector<1x256xi1> to vector<1x256xi1>
    %93 = vector.broadcast %92 : vector<1x256xi1> to vector<16x256xi1>
    %94 = vector.broadcast %cst_47 : f32 to vector<16x256xf32>
    %95 = arith.select %93, %85, %94 : vector<16x256xi1>, vector<16x256xf32>
    %96 = vector.extract_strided_slice %95 {offsets = [0, 0], sizes = [16, 128], strides = [1, 1]} : vector<16x256xf32> to vector<16x128xf32>
    %97 = vector.extract_strided_slice %95 {offsets = [0, 2], sizes = [16, 128], strides = [1, 1]} : vector<16x256xf32> to vector<16x128xf32>
    %98 = vector.extract_strided_slice %95 {offsets = [0, 4], sizes = [16, 128], strides = [1, 1]} : vector<16x256xf32> to vector<16x128xf32>
    %99 = vector.extract_strided_slice %95 {offsets = [0, 6], sizes = [16, 128], strides = [1, 1]} : vector<16x256xf32> to vector<16x128xf32>
    %100 = vector.extract_strided_slice %95 {offsets = [0, 8], sizes = [16, 128], strides = [1, 1]} : vector<16x256xf32> to vector<16x128xf32>
    %101 = tpu.concatenate %96, %97, %98, %99, %100 in 0 : vector<16x128xf32>, vector<16x128xf32>, vector<16x128xf32>, vector<16x128xf32>, vector<16x128xf32> -> vector<80x128xf32>
    %cst_48 = arith.constant dense<0.000000e+00> : vector<16x128xf32>
    %102 = tpu.matmul %65, %101, %cst_48 {dimension_numbers = #tpu.dot_dimension_numbers<[1], [0], [0], [1], [0, 0, 1, 1], [], []>} : vector<16x80xf32>, vector<80x128xf32>, vector<16x128xf32> -> vector<16x128xf32>
    %103 = vector.broadcast %66 : vector<16x1xf32> to vector<16x128xf32>
    %104 = arith.mulf %102, %103 : vector<16x128xf32>
    %105 = vector.broadcast %67 : vector<16x1xf32> to vector<16x128xf32>
    %106 = arith.addf %104, %105 : vector<16x128xf32>
    %cst_49 = arith.constant 0.000000e+00 : f32
    %107 = vector.broadcast %cst_49 : f32 to vector<16x128xf32>
    %108 = arith.maximumf %106, %107 : vector<16x128xf32>
    %cst_50 = arith.constant dense<0.000000e+00> : vector<16x128xf32>
    %109 = tpu.matmul %68, %61, %cst_50 {dimension_numbers = #tpu.dot_dimension_numbers<[1], [0], [0], [1], [0, 0, 1, 1], [], []>} : vector<16x16xf32>, vector<16x128xf32>, vector<16x128xf32> -> vector<16x128xf32>
    %110 = vector.broadcast %69 : vector<16x1xf32> to vector<16x128xf32>
    %111 = arith.addf %109, %110 : vector<16x128xf32>
    %112 = arith.addf %108, %111 : vector<16x128xf32>
    %cst_51 = arith.constant 0.000000e+00 : f32
    %113 = vector.broadcast %cst_51 : f32 to vector<16x128xf32>
    %114 = arith.maximumf %112, %113 : vector<16x128xf32>
    %115 = tpu.iota {dimensions = array<i32: 1>} : vector<1x128xi32>
    %c16_i32_52 = arith.constant 16 : i32
    %116 = vector.broadcast %c16_i32_52 : i32 to vector<1x128xi32>
    %117 = arith.cmpi slt, %115, %116 : vector<1x128xi32>
    %cst_53 = arith.constant 0.000000e+00 : f32
    %118 = vector.shape_cast %117 : vector<1x128xi1> to vector<1x128xi1>
    %119 = vector.broadcast %118 : vector<1x128xi1> to vector<16x128xi1>
    %120 = vector.broadcast %cst_53 : f32 to vector<16x128xf32>
    %121 = arith.select %119, %114, %120 : vector<16x128xi1>, vector<16x128xf32>
    %c0_54 = arith.constant 0 : index
    %c0_55 = arith.constant 0 : index
    %c0_56 = arith.constant 0 : index
    %122 = vector.load %arg18[%c0_54, %c0_55, %c0_56] : memref<1x16x128xf32, #tpu.memory_space<vmem>>, vector<1x16x128xf32>
    %123 = vector.shape_cast %122 : vector<1x16x128xf32> to vector<16x128xf32>
    %124 = vector.shape_cast %121 : vector<16x128xf32> to vector<1x16x128xf32>
    tpu.vector_store %arg18[%c0_54, %c0_55, %c0_56], %124 {strides = array<i32>} : memref<1x16x128xf32, #tpu.memory_space<vmem>>, vector<1x16x128xf32>,
    return
  }
  func.func @transform_0(%arg0: i32) -> (i32, i32, i32) {
    %c0_i32 = arith.constant 0 : i32
    %c0_i32_0 = arith.constant 0 : i32
    %c0_i32_1 = arith.constant 0 : i32
    return %arg0, %c0_i32, %c0_i32_0 : i32, i32, i32
  }
  func.func @transform_1(%arg0: i32) -> (i32, i32) {
    %c0_i32 = arith.constant 0 : i32
    %c0_i32_0 = arith.constant 0 : i32
    %c0_i32_1 = arith.constant 0 : i32
    return %c0_i32, %c0_i32_0 : i32, i32
  }
  func.func @transform_2(%arg0: i32) -> (i32, i32) {
    %c0_i32 = arith.constant 0 : i32
    %c0_i32_0 = arith.constant 0 : i32
    %c0_i32_1 = arith.constant 0 : i32
    return %c0_i32, %c0_i32_0 : i32, i32
  }
  func.func @transform_3(%arg0: i32) -> (i32, i32) {
    %c0_i32 = arith.constant 0 : i32
    %c0_i32_0 = arith.constant 0 : i32
    %c0_i32_1 = arith.constant 0 : i32
    return %c0_i32, %c0_i32_0 : i32, i32
  }
  func.func @transform_4(%arg0: i32) -> (i32, i32) {
    %c0_i32 = arith.constant 0 : i32
    %c0_i32_0 = arith.constant 0 : i32
    %c0_i32_1 = arith.constant 0 : i32
    return %c0_i32, %c0_i32_0 : i32, i32
  }
  func.func @transform_5(%arg0: i32) -> (i32, i32) {
    %c0_i32 = arith.constant 0 : i32
    %c0_i32_0 = arith.constant 0 : i32
    %c0_i32_1 = arith.constant 0 : i32
    return %c0_i32, %c0_i32_0 : i32, i32
  }
  func.func @transform_6(%arg0: i32) -> (i32, i32) {
    %c0_i32 = arith.constant 0 : i32
    %c0_i32_0 = arith.constant 0 : i32
    %c0_i32_1 = arith.constant 0 : i32
    return %c0_i32, %c0_i32_0 : i32, i32
  }
  func.func @transform_7(%arg0: i32) -> (i32, i32) {
    %c0_i32 = arith.constant 0 : i32
    %c0_i32_0 = arith.constant 0 : i32
    %c0_i32_1 = arith.constant 0 : i32
    return %c0_i32, %c0_i32_0 : i32, i32
  }
  func.func @transform_8(%arg0: i32) -> (i32, i32) {
    %c0_i32 = arith.constant 0 : i32
    %c0_i32_0 = arith.constant 0 : i32
    %c0_i32_1 = arith.constant 0 : i32
    return %c0_i32, %c0_i32_0 : i32, i32
  }
  func.func @transform_9(%arg0: i32) -> (i32, i32) {
    %c0_i32 = arith.constant 0 : i32
    %c0_i32_0 = arith.constant 0 : i32
    %c0_i32_1 = arith.constant 0 : i32
    return %c0_i32, %c0_i32_0 : i32, i32
  }
  func.func @transform_10(%arg0: i32) -> (i32, i32) {
    %c0_i32 = arith.constant 0 : i32
    %c0_i32_0 = arith.constant 0 : i32
    %c0_i32_1 = arith.constant 0 : i32
    return %c0_i32, %c0_i32_0 : i32, i32
  }
  func.func @transform_11(%arg0: i32) -> (i32, i32) {
    %c0_i32 = arith.constant 0 : i32
    %c0_i32_0 = arith.constant 0 : i32
    %c0_i32_1 = arith.constant 0 : i32
    return %c0_i32, %c0_i32_0 : i32, i32
  }
  func.func @transform_12(%arg0: i32) -> (i32, i32) {
    %c0_i32 = arith.constant 0 : i32
    %c0_i32_0 = arith.constant 0 : i32
    %c0_i32_1 = arith.constant 0 : i32
    return %c0_i32, %c0_i32_0 : i32, i32
  }
  func.func @transform_13(%arg0: i32) -> (i32, i32) {
    %c0_i32 = arith.constant 0 : i32
    %c0_i32_0 = arith.constant 0 : i32
    %c0_i32_1 = arith.constant 0 : i32
    return %c0_i32, %c0_i32_0 : i32, i32
  }
  func.func @transform_14(%arg0: i32) -> (i32, i32) {
    %c0_i32 = arith.constant 0 : i32
    %c0_i32_0 = arith.constant 0 : i32
    %c0_i32_1 = arith.constant 0 : i32
    return %c0_i32, %c0_i32_0 : i32, i32
  }
  func.func @transform_15(%arg0: i32) -> (i32, i32) {
    %c0_i32 = arith.constant 0 : i32
    %c0_i32_0 = arith.constant 0 : i32
    %c0_i32_1 = arith.constant 0 : i32
    return %c0_i32, %c0_i32_0 : i32, i32
  }
  func.func @transform_16(%arg0: i32) -> (i32, i32) {
    %c0_i32 = arith.constant 0 : i32
    %c0_i32_0 = arith.constant 0 : i32
    %c0_i32_1 = arith.constant 0 : i32
    return %c0_i32, %c0_i32_0 : i32, i32
  }
  func.func @transform_17(%arg0: i32) -> (i32, i32, i32) {
    %c0_i32 = arith.constant 0 : i32
    %c0_i32_0 = arith.constant 0 : i32
    %c0_i32_1 = arith.constant 0 : i32
    return %arg0, %c0_i32, %c0_i32_0 : i32, i32, i32
  }
}

</mosaic_0001>

<bundles_post_ra>
// kernel: tpu_custom_call.1
= control target key start
LH: loop header
LB: loop body
LE: loop exit
PB: predicated region body
PF: predicated region fallthrough
CT: control target
= control target key end

     0   :  { %s2222_s0 = inlined_call_operand.vmem [shape: f32[2,8,128], index: 0, kind: input, shape index: {}]   ;;  %s2223_s1 = inlined_call_operand.vmem [shape: f32[16,40], index: 1, kind: input, shape index: {}]   ;;  %s2224_s2 = inlined_call_operand.vmem [shape: f32[16,1], index: 2, kind: input, shape index: {}]   ;;  %s2225_s3 = inlined_call_operand.vmem [shape: f32[16,1], index: 3, kind: input, shape index: {}]   ;;  %s2226_s4 = inlined_call_operand.vmem [shape: f32[16,80], index: 4, kind: input, shape index: {}]   ;;  %s2227_s5 = inlined_call_operand.vmem [shape: f32[16,1], index: 5, kind: input, shape index: {}]   ;;  %s2228_s6 = inlined_call_operand.vmem [shape: f32[16,1], index: 6, kind: input, shape index: {}]   ;;  %s2229_s7 = inlined_call_operand.vmem [shape: f32[16,8], index: 7, kind: input, shape index: {}]   ;;  %s2230_s8 = inlined_call_operand.vmem [shape: f32[16,1], index: 8, kind: input, shape index: {}]   ;;  %s2231_s9 = inlined_call_operand.vmem [shape: f32[16,80], index: 9, kind: input, shape index: {}]   ;;  %s2232_s10 = inlined_call_operand.vmem [shape: f32[16,1], index: 10, kind: input, shape index: {}]   ;;  %s2233_s11 = inlined_call_operand.vmem [shape: f32[16,1], index: 11, kind: input, shape index: {}]   ;;  %s2234_s12 = inlined_call_operand.vmem [shape: f32[16,80], index: 12, kind: input, shape index: {}]   ;;  %s2235_s13 = inlined_call_operand.vmem [shape: f32[16,1], index: 13, kind: input, shape index: {}]   ;;  %s2236_s14 = inlined_call_operand.vmem [shape: f32[16,1], index: 14, kind: input, shape index: {}]   ;;  %s2237_s15 = inlined_call_operand.vmem [shape: f32[16,16], index: 15, kind: input, shape index: {}]   ;;  %s2238_s16 = inlined_call_operand.vmem [shape: f32[16,1], index: 16, kind: input, shape index: {}]   ;;  %s2239_s17 = inlined_call_operand.hbm [shape: f32[2,16,128], index: 17, kind: output, shape index: {}]  }
   0x1   :  { %2258 = sst [smem:[#allocation8_spill]] %s2222_s0 }
   0x2   :  { %2259 = sst [smem:[#allocation9_spill]] %s2223_s1 }
   0x3   :  { %2260 = sst [smem:[#allocation10_spill]] %s2224_s2 }
   0x4   :  { %2261 = sst [smem:[#allocation11_spill]] %s2225_s3 }
   0x5   :  { %2262 = sst [smem:[#allocation12_spill]] %s2229_s7 }
   0x6   :  { %22 = vsyncpa [#allocation3], 0 }
   0x7   :  { %24 = vsyncpa [#allocation3 + $0x1], 0  ;;  %s1710_s24 = smov 0   ;;  %s1712_s25 = smov 0  }
   0x8   :  { %s1714_s26 = smov 0   ;;  %s1716_s27 = smov 0  }
   0x9 LB: > { %2263 = sst [smem:[#allocation5_spill]] %s1603_s26  ;;  %s1731_s28 = sadd.s32 4294967295, %s1607_s27   ;;  %s1607_s27 = sphi %s1716_s27, %s2284_s27   ;;  %s1603_s26 = sphi %s1714_s26, %s2286_s26   ;;  %s1599_s25 = sphi %s1712_s25, %s2288_s25   ;;  %s1595_s24 = sphi %s1710_s24, %s2287_s24  }
   0xa   : > { %s1307_s29 = sadd.s32 4294967294, %s1607_s27   ;;  %s1735_s0 = sadd.s32 1, %s1607_s27  }
   0xb   : > { %2264 = sst [smem:[#allocation6_spill]] %s1735_s0  ;;  %s399_s30 = sadd.s32 1, %s1603_s26 }
   0xc   : > { %s396_s18 = ssub.s32 %s1607_s27, %s1735_s0  ;;  %p409_p0 = scmp.ne.s32.totalorder %s1603_s26, %s1599_s25 }
   0xd   : > { %p397_p1 = scmp.eq.s32.totalorder %s396_s18, 0  ;;  %p410_p2 = scmp.eq.s32.totalorder %s1731_s28, 1 }
   0xe   : > { %p415_p3 = scmp.ne.s32.totalorder %s1599_s25, %s1595_s24  ;;  %p416_p4 = scmp.eq.s32.totalorder %s1307_s29, 1 }
   0xf   : > { %s1746_s19 = scalar_select %p397_p1, %s1603_s26, %s399_s30  }
  0x10   : > { %p1748_p5 = por %p410_p2, %p409_p0  ;;  %p1752_p6 = por %p416_p4, %p415_p3 }
  0x11   : > { %2265 = sst [smem:[#allocation7_spill]] %s1746_s19  ;;  %p1310_p7 = scmp.ge.s32.totalorder %s1607_s27, 1 }
  0x12   : > { %p489_p8 = scmp.lt.s32.totalorder %s1607_s27, 3 }
  0x14   : > { %p490_p9 = pnand %p1310_p7, %p489_p8 }
  0x15   : > { %p540_p10 = scmp.lt.s32.totalorder (!%p490_p9), %s1731_s28, 1  ;;  %s2268_s30 = sld [smem:[#allocation8_spill]] (!%p490_p9) }
  0x16   : > { %493 = sbr.rel (%p490_p9) target bundleno = 1409 (0x581), region = 88  ;;  %s1609_s19 = smov (!%p490_p9), 4  }
  0x17   : > { %s2242_s26 = smov (!%p490_p9), 127   ;;  %s2269_s2 = sld [smem:[#allocation10_spill]] (!%p490_p9) }
  0x18   : > { %s2270_s3 = sld [smem:[#allocation11_spill]] (!%p490_p9)  ;;  %s2256_s0 = smov (!%p490_p9), 122  }
  0x19   : > { %s2272_s7 = sld [smem:[#allocation12_spill]] (!%p490_p9)  ;;  %s2277_s29 = smov (!%p490_p9), 124  }
  0x1a   : > { %s2278_s23 = smov (!%p490_p9), 126  }
  0x1b   : > { %s541_s21 = scalar_select %p540_p10, %s1731_s28, 1  ;;  %vm565_vm0 = vcmask 31744   ;;  %v1614_v7 = vmov 0   ;;  %vm610_vm1 = vcmask 1014784   ;;  %vm599_vm2 = vcmask 1022976   ;;  %v556_v49 = vld [vmem:[%s2228_s6 + $0x8] sm:$0xff] }
  0x1c   : > { %1423 = vset.pattern.permute.xlu0 %v1614_v7  ;;  %1424 = vset.pattern.permute.xlu1 %v1614_v7  ;;  %vm588_vm3 = vcmask 1031168   ;;  %vm577_vm4 = vcmask 1039360   ;;  %vm1313_vm5 = vmneg %vm565_vm0  ;;  %vm615_vm6 = vcmask 326656   ;;  %vm835_vm7 = vcmask 64512   ;;  %v554_v50 = vld [vmem:[%s2227_s5 + $0x8] sm:$0xff]  ;;  %v559_v51 = vld [vmem:[%s2230_s8] sm:$0xff] }
  0x1d   : > { %s1312_s22 = sshll.u32 %s541_s21, 3  ;;  %s2246_s21 = smov 125   ;;  %v547_v5 = vld [vmem:[%s2269_s2] sm:$0xff]  ;;  %v548_v8 = vld [vmem:[%s2269_s2 + $0x8] sm:$0xff]  ;;  %1422 = vset.pattern.permute.xlu2 %v1614_v7  ;;  %v700_v30 = vlaneseq  ;;  %vm769_vm11 = vcmask 654336   ;;  %vm967_vm13 = vcmask 982016   ;;  %vm1326_vm15 = vmneg %vm835_vm7 }
  0x1e   : > { %s543_s18 = scalar_lea.vmem %s2268_s30, %s1312_s22  ;;  %s2248_s22 = smov 124   ;;  %v550_v6 = vld [vmem:[%s2270_s3 + $0x8] sm:$0xff]  ;;  %v549_v15 = vld [vmem:[%s2270_s3] sm:$0xff]  ;;  %vm948_vm14 = vcmask 998400  }
  0x1f   : > { %v544_v0 = vld [vmem:[%s543_s18] sm:$0xff]  ;;  %s2271_s30 = sld [smem:[#allocation9_spill]]  ;;  %v558_v31 = vld [vmem:[%s2272_s7 + $0x8] sm:$0xff]  ;;  %v1837_v32 = vand.u32 127, %v700_v30  ;;  %s2276_s18 = smov 127  }
  0x20   : > { %562 = vrot.lane.b32.xlu0 %v544_v0, %s1609_s19  ;;  %857 = vmatpush.msra.mxu3 %v544_v0  ;;  %s2250_s19 = smov 126   ;;  %v557_v28 = vld [vmem:[%s2272_s7] sm:$0xff]  ;;  %v560_v54 = vld [vmem:[%s2230_s8 + $0x8] sm:$0xff]  ;;  %s2281_s7 = smov 120  }
  0x21   : > { %1324 = vmatmul.msk.f32.vlgmr.msra.gmra.mxu3 %vm835_vm7, %v557_v28  ;;  %vm703_vm8 = vcmp.ge.s32.totalorder %v1837_v32, 2  ;;  %vm705_vm9 = vcmp.lt.s32.totalorder %v1837_v32, 18  ;;  %v555_v52 = vld [vmem:[%s2228_s6] sm:$0xff]  ;;  %vm869_vm12 = vcmp.lt.s32.totalorder %v1837_v32, 16  ;;  %s1349_s2 = sshll.u32 %s1731_s28, 4 }
  0x22   : > { %vm1843_vm10 = vmand %vm703_vm8, %vm705_vm9  ;;  %v553_v53 = vld [vmem:[%s2227_s5] sm:$0xff]  ;;  %vm1060_vm8 = vcmp.ge.s32.totalorder %v1837_v32, 4  ;;  %vm1062_vm9 = vcmp.lt.s32.totalorder %v1837_v32, 20 }
  0x25   : > { %v1817_v26 = vld [vmem:[%s2271_s30] sm:$0xff]  ;;  %v1825_v27 = vld [vmem:[%s2271_s30 + $0x8] sm:$0xff]  ;;  %s2254_s30 = smov 120  }
  0x29   : > { %1325 = vmatmul.msk.f32.gmra.mxu3 %vm835_vm7, %v558_v31 }
  0x92   : > { %v1763_v1 = vpop.permute.xlu0 %562 }
  0x93   : > { %v566_v2 = vsel %vm565_vm0, 0.0, %v1763_v1  ;;  %v567_v3 = vsel %vm565_vm0, %v1763_v1, 0.0 }
  0x94   : > { %v1417_v4 = vpack.i.bf16 %v567_v3, %v566_v2 }
  0x96   : > { %1418 = vrot.lane.b32.xlu2 %v1417_v4, %s2242_s26  ;;  %1408 = vrot.lane.b32.xlu1 %v1417_v4, %s2246_s21  ;;  %s2275_s21 = smov 125  }
  0x97   : > { %1403 = vrot.lane.b32.xlu0 %v1417_v4, %s2248_s22 }
  0x9e   : > { %1413 = vrot.lane.b32.xlu1 %v1417_v4, %s2250_s19  ;;  %675 = vperm.xlu2 %1422, %v548_v8  }
  0x9f   : > { %670 = vperm.xlu0 %1423, %v547_v5  }
  0xa6   : > { %689 = vperm.xlu1 %1424, %v550_v6   ;;  %684 = vperm.xlu2 %1422, %v549_v15  }
  0xf0   : > { %v1796_v17 = vpop.permute.xlu2 %1418 }
  0xf1   : > { %v1421_v20 = vunpack.i.h.bf16 %v1796_v17  ;;  %v1420_v21 = vunpack.i.l.bf16 %v1796_v17 }
  0xf3   : > { %v578_v25 = vsel %vm577_vm4, %v1420_v21, %v1421_v20 }
  0xf8   : > { %v676_v29 = vpop.permute.xlu2 %675 }
 0x100   : > { %v685_v35 = vpop.permute.xlu2 %684 }
 0x108   : > { %v1782_v9 = vpop.permute.xlu1 %1408 }
 0x109   : > { %v1784_v10 = vpop.permute.xlu0 %1403  ;;  %v1411_v11 = vunpack.i.h.bf16 %v1782_v9  ;;  %v1410_v12 = vunpack.i.l.bf16 %v1782_v9 }
 0x10a   : > { %v1406_v13 = vunpack.i.h.bf16 %v1784_v10  ;;  %v1405_v14 = vunpack.i.l.bf16 %v1784_v10 }
 0x10b   : > { %v600_v18 = vsel %vm599_vm2, %v1410_v12, %v1411_v11 }
 0x10c   : > { %v611_v16 = vsel %vm610_vm1, %v1405_v14, %v1406_v13 }
 0x10d   : > { %633 = vmatpush.msra.mxu0 %v611_v16 }
 0x10f   : > { %634 = vmatpush.msra.mxu0 %v600_v18 }
 0x110   : > { %v1801_v19 = vpop.permute.xlu1 %1413 }
 0x111   : > { %v1416_v22 = vunpack.i.h.bf16 %v1801_v19  ;;  %v1415_v23 = vunpack.i.l.bf16 %v1801_v19  ;;  %v671_v33 = vpop.permute.xlu0 %670 }
 0x113   : > { %v589_v24 = vsel %vm588_vm3, %v1415_v23, %v1416_v22 }
 0x114   : > { %635 = vmatpush.msra.mxu0 %v589_v24 }
 0x116   : > { %636 = vmatpush.msra.mxu0 %v578_v25 }
 0x118   : > { %1314 = vmatpush.msk.msra.mxu0 %vm1313_vm5, %v1763_v1  ;;  %v690_v42 = vpop.permute.xlu1 %689  ;;  %vm1191_vm5 = vcmask 130048  }
 0x119   : > { %1315 = vmatmul.msk.f32.vlgmr.msra.gmra.mxu0 %vm615_vm6, %v1817_v26 }
 0x121   : > { %1316 = vmatmul.msk.f32.gmra.mxu0 %vm615_vm6, %v1825_v27 }
 0x196   : > { %v639_v34 = vpop.f32.mrf.mxu0 }
 0x197   : > { %v678_v36 = vmul.f32 %v671_v33, %v639_v34 }
 0x199   : > { %v1841_v37 = vadd.f32 %v685_v35, %v678_v36  ;;  %v551_v35 = vld [vmem:[%s2226_s4] sm:$0xff]  ;;  %v552_v36 = vld [vmem:[%s2226_s4 + $0x8] sm:$0xff] }
 0x19b   : > { %v696_v39 = vmax.f32 %v1841_v37, 0.0 }
 0x19d   : > { %v713_v40 = vsel %vm1843_vm10, %v696_v39, 0.0 }
 0x19e   : > { %v642_v41 = vpop.f32.mrf.mxu0  ;;  %v1425_v43 = vpack.i.bf16 0.0, %v713_v40 }
 0x19f   : > { %v680_v44 = vmul.f32 %v676_v29, %v642_v41 }
 0x1a0   : > { %1426 = vrot.lane.b32.xlu2 %v1425_v43, %s2248_s22 }
 0x1a1   : > { %v1853_v45 = vadd.f32 %v690_v42, %v680_v44  ;;  %v859_v44 = vpop.f32.mrf.mxu3 }
 0x1a3   : > { %v698_v46 = vmax.f32 %v1853_v45, 0.0 }
 0x1a5   : > { %v715_v47 = vsel %vm1843_vm10, %v698_v46, 0.0 }
 0x1a6   : > { %v1450_v48 = vpack.i.bf16 0.0, %v715_v47 }
 0x1a8   : > { %1451 = vrot.lane.b32.xlu2 %v1450_v48, %s2250_s19  ;;  %1441 = vrot.lane.b32.xlu0 %v1450_v48, %s2275_s21 }
 0x1a9   : > { %1431 = vrot.lane.b32.xlu1 %v1450_v48, %s2248_s22  ;;  %s2282_s22 = smov 122  }
 0x1b0   : > { %1461 = vrot.lane.b32.xlu2 %v1425_v43, %s2276_s18  ;;  %1446 = vrot.lane.b32.xlu0 %v1425_v43, %s2250_s19  ;;  %s2253_s19 = smov 8  }
 0x1b1   : > { %1436 = vrot.lane.b32.xlu1 %v1425_v43, %s2275_s21 }
 0x1b8   : > { %818 = vperm.xlu2 %1422, %v556_v49   ;;  %806 = vperm.xlu0 %1423, %v554_v50  }
 0x1b9   : > { %1456 = vrot.lane.b32.xlu1 %v1450_v48, %s2276_s18 }
 0x1c0   : > { %827 = vperm.xlu2 %1422, %v559_v51   ;;  %813 = vperm.xlu0 %1423, %v555_v52  }
 0x1c1   : > { %801 = vperm.xlu1 %1424, %v553_v53   ;;  %v862_v53 = vpop.f32.mrf.mxu3 }
 0x1c9   : > { %832 = vperm.xlu1 %1424, %v560_v54  }
 0x1fa   : > { %v1427_v55 = vpop.permute.xlu2 %1426 }
 0x1fb   : > { %v1429_v58 = vunpack.i.h.bf16 %v1427_v55  ;;  %v1428_v59 = vunpack.i.l.bf16 %v1427_v55 }
 0x1fd   : > { %v765_v3 = vsel %vm610_vm1, %v1428_v59, %v1429_v58 }
 0x202   : > { %v1452_v2 = vpop.permute.xlu2 %1451 }
 0x203   : > { %v1454_v7 = vunpack.i.h.bf16 %v1452_v2  ;;  %v1453_v8 = vunpack.i.l.bf16 %v1452_v2 }
 0x205   : > { %v742_v21 = vsel %vm588_vm3, %v1453_v8, %v1454_v7  ;;  %v879_v7 = vld [vmem:[%s2233_s11 + $0x8] sm:$0xff]  ;;  %v878_v8 = vld [vmem:[%s2233_s11] sm:$0xff] }
 0x20a   : > { %v1462_v23 = vpop.permute.xlu2 %1461 }
 0x20b   : > { %v1464_v28 = vunpack.i.h.bf16 %v1462_v23  ;;  %v1463_v29 = vunpack.i.l.bf16 %v1462_v23 }
 0x20d   : > { %v729_v34 = vsel %vm577_vm4, %v1463_v29, %v1464_v28 }
 0x212   : > { %v819_v40 = vpop.permute.xlu2 %818 }
 0x21a   : > { %v1442_v56 = vpop.permute.xlu0 %1441 }
 0x21b   : > { %v1432_v57 = vpop.permute.xlu1 %1431  ;;  %v1444_v62 = vunpack.i.h.bf16 %v1442_v56  ;;  %v1443_v63 = vunpack.i.l.bf16 %v1442_v56 }
 0x21c   : > { %v1434_v60 = vunpack.i.h.bf16 %v1432_v57  ;;  %v1433_v61 = vunpack.i.l.bf16 %v1432_v57 }
 0x21d   : > { %v754_v4 = vsel %vm599_vm2, %v1443_v63, %v1444_v62 }
 0x21e   : > { %v766_v0 = vsel %vm610_vm1, %v1433_v61, %v1434_v60 }
 0x21f   : > { %782 = vmatpush.msra.mxu2 %v766_v0 }
 0x221   : > { %783 = vmatpush.msra.mxu2 %v765_v3 }
 0x222   : > { %v1447_v5 = vpop.permute.xlu0 %1446 }
 0x223   : > { %v1437_v6 = vpop.permute.xlu1 %1436  ;;  %784 = vmatpush.msra.mxu2 %v754_v4  ;;  %v1449_v15 = vunpack.i.h.bf16 %v1447_v5  ;;  %v1448_v16 = vunpack.i.l.bf16 %v1447_v5 }
 0x224   : > { %v1439_v12 = vunpack.i.h.bf16 %v1437_v6  ;;  %v1438_v14 = vunpack.i.l.bf16 %v1437_v6  ;;  %v877_v6 = vld [vmem:[%s2232_s10 + $0x8] sm:$0xff] }
 0x225   : > { %v741_v24 = vsel %vm588_vm3, %v1448_v16, %v1449_v15 }
 0x226   : > { %v753_v18 = vsel %vm599_vm2, %v1438_v14, %v1439_v12  ;;  %v876_v12 = vld [vmem:[%s2232_s10] sm:$0xff]  ;;  %v1618_v14 = vmov 0.0  }
 0x227   : > { %785 = vmatpush.msra.mxu2 %v753_v18 }
 0x229   : > { %786 = vmatpush.msra.mxu2 %v742_v21 }
 0x22a   : > { %v807_v41 = vpop.permute.xlu0 %806 }
 0x22b   : > { %v1457_v25 = vpop.permute.xlu1 %1456  ;;  %787 = vmatpush.msra.mxu2 %v741_v24 }
 0x22c   : > { %v1459_v30 = vunpack.i.h.bf16 %v1457_v25  ;;  %v1458_v31 = vunpack.i.l.bf16 %v1457_v25 }
 0x22e   : > { %v730_v33 = vsel %vm577_vm4, %v1458_v31, %v1459_v30 }
 0x22f   : > { %788 = vmatpush.msra.mxu2 %v730_v33 }
 0x231   : > { %789 = vmatpush.msra.mxu2 %v729_v34 }
 0x232   : > { %v814_v47 = vpop.permute.xlu0 %813 }
 0x233   : > { %1320 = vmatpush.msk.msra.mxu2 %vm1843_vm10, %v698_v46  ;;  %v802_v42 = vpop.permute.xlu1 %801  ;;  %v828_v46 = vpop.permute.xlu2 %827 }
 0x234   : > { %v860_v48 = vadd.f32 %v859_v44, %v828_v46 }
 0x235   : > { %1321 = vmatpush.msk.msra.mxu2 %vm1843_vm10, %v696_v39  ;;  %vm2051_vm10 = vmand %vm1060_vm8, %vm1062_vm9 }
 0x236   : > { %1322 = vmatmul.msk.f32.vlgmr.msra.gmra.mxu2 %vm769_vm11, %v551_v35 }
 0x23b   : > { %v833_v52 = vpop.permute.xlu1 %832 }
 0x23c   : > { %v863_v56 = vadd.f32 %v862_v53, %v833_v52 }
 0x23e   : > { %1323 = vmatmul.msk.f32.gmra.mxu2 %vm769_vm11, %v552_v36 }
 0x2b9   : > { %v793_v43 = vpop.f32.mrf.mxu2 }
 0x2ba   : > { %v809_v45 = vmul.f32 %v802_v42, %v793_v43 }
 0x2bc   : > { %v821_v37 = vadd.f32 %v814_v47, %v809_v45 }
 0x2be   : > { %v823_v38 = vmax.f32 %v821_v37, 0.0 }
 0x2c0   : > { %v865_v39 = vadd.f32 %v860_v48, %v823_v38 }
 0x2c1   : > { %v796_v49 = vpop.f32.mrf.mxu2 }
 0x2c2   : > { %v1906_v50 = vmax.f32 %v865_v39, 0.0  ;;  %v810_v51 = vmul.f32 %v807_v41, %v796_v49 }
 0x2c4   : > { %v822_v54 = vadd.f32 %v819_v40, %v810_v51  ;;  %v872_v55 = vsel %vm869_vm12, %v1906_v50, 0.0 }
 0x2c5   : > { %892 = vrot.lane.b32.xlu1 %v872_v55, %s2253_s19  ;;  %v2023_v55 = vld [vmem:[%s2231_s9] sm:$0xff] }
 0x2c6   : > { %v824_v57 = vmax.f32 %v822_v54, 0.0 }
 0x2c8   : > { %v866_v58 = vadd.f32 %v863_v56, %v824_v57  ;;  %v2037_v56 = vld [vmem:[%s2231_s9 + $0x8] sm:$0xff]  ;;  %v886_v57 = vld [vmem:[%s2237_s15] sm:$0xff] }
 0x2ca   : > { %v1912_v59 = vmax.f32 %v866_v58, 0.0 }
 0x2cc   : > { %1340 = vmatpush.msk.msrb.mxu2 %vm869_vm12, %v1912_v59  ;;  %v873_v60 = vsel %vm869_vm12, %v1912_v59, 0.0 }
 0x2cd   : > { %894 = vrot.lane.b32.xlu0 %v873_v60, %s2253_s19 }
 0x2ce   : > { %1341 = vmatpush.msk.msrb.mxu2 %vm869_vm12, %v1906_v50 }
 0x2cf   : > { %1342 = vmatmul.msk.f32.vlgmr.msrb.gmra.mxu2 %vm1191_vm5, %v886_v57 }
 0x337   : > { %v1924_v61 = vpop.permute.xlu1 %892 }
 0x338   : > { %v898_v62 = vsel %vm835_vm7, 0.0, %v1924_v61  ;;  %v900_v63 = vsel %vm835_vm7, %v1924_v61, 0.0 }
 0x339   : > { %v1465_v0 = vpack.i.bf16 %v900_v63, %v898_v62 }
 0x33b   : > { %1466 = vrot.lane.b32.xlu0 %v1465_v0, %s2254_s30 }
 0x33f   : > { %v1931_v2 = vpop.permute.xlu0 %894 }
 0x340   : > { %v899_v3 = vsel %vm835_vm7, 0.0, %v1931_v2  ;;  %v901_v4 = vsel %vm835_vm7, %v1931_v2, 0.0 }
 0x341   : > { %v1470_v5 = vpack.i.bf16 %v901_v4, %v899_v3 }
 0x343   : > { %1471 = vrot.lane.b32.xlu2 %v1470_v5, %s2254_s30  ;;  %1481 = vrot.lane.b32.xlu1 %v1470_v5, %s2256_s0 }
 0x344   : > { %1491 = vrot.lane.b32.xlu0 %v1470_v5, %s2277_s29 }
 0x34b   : > { %1486 = vrot.lane.b32.xlu1 %v1465_v0, %s2277_s29  ;;  %1476 = vrot.lane.b32.xlu2 %v1465_v0, %s2256_s0  ;;  %s537_s0 = sand.u32 1, %s1599_s25  }
 0x34c   : > { %1501 = vrot.lane.b32.xlu0 %v1465_v0, %s2278_s23  ;;  %v887_v0 = vld [vmem:[%s2237_s15 + $0x8] sm:$0xff]  ;;  %s1311_s26 = sshll.u32 %s537_s0, 4  ;;  %s1230_s28 = scalar_lea.sflag [#allocation3], %s537_s0 }
 0x34d   : > { %s539_s3 = scalar_lea.vmem [#allocation2], %s1311_s26 }
 0x353   : > { %1035 = vperm.xlu1 %1424, %v877_v6   ;;  %1496 = vrot.lane.b32.xlu2 %v1470_v5, %s2278_s23 }
 0x354   : > { %1049 = vperm.xlu0 %1423, %v879_v7  }
 0x35b   : > { %1044 = vperm.xlu1 %1424, %v878_v8   ;;  %1030 = vperm.xlu2 %1422, %v876_v12  }
 0x35c   : > { %597 = vrot.lane.b32.xlu0 %v1618_v14, %s2275_s21  ;;  %s1241_s21 = scalar_lea.hbm %s2239_s17, %s1349_s2  ;;  %s1565_s2 = scalar_lea.hbm %s2239_s17, 32 }
 0x363   : > { %586 = vrot.lane.b32.xlu1 %v1618_v14, %s2278_s23  ;;  %575 = vrot.lane.b32.xlu2 %v1618_v14, %s2276_s18  ;;  %s1242_s18 = sshll.u32 %s539_s3, 4  ;;  %s1243_s18 = int_to_ptr.vmem [resolvable:$true] %s1242_s18 }
 0x39d   : > { %v1962_v15 = vpop.permute.xlu2 %1471 }
 0x39e   : > { %v1474_v16 = vunpack.i.h.bf16 %v1962_v15  ;;  %v1473_v18 = vunpack.i.l.bf16 %v1962_v15 }
 0x3a0   : > { %v970_v21 = vsel %vm967_vm13, %v1473_v18, %v1474_v16 }
 0x3a1   : > { %988 = vmatpush.msrb.mxu3 %v970_v21 }
 0x3a5   : > { %v1976_v29 = vpop.permute.xlu2 %1476 }
 0x3a6   : > { %v1479_v31 = vunpack.i.h.bf16 %v1976_v29  ;;  %v1478_v33 = vunpack.i.l.bf16 %v1976_v29 }
 0x3a8   : > { %v949_v43 = vsel %vm948_vm14, %v1478_v33, %v1479_v31 }
 0x3ad   : > { %v1969_v23 = vpop.permute.xlu0 %1466  ;;  %v1994_v44 = vpop.permute.xlu2 %1496 }
 0x3ae   : > { %v1469_v24 = vunpack.i.h.bf16 %v1969_v23  ;;  %v1468_v25 = vunpack.i.l.bf16 %v1969_v23  ;;  %v1499_v47 = vunpack.i.h.bf16 %v1994_v44  ;;  %v1498_v37 = vunpack.i.l.bf16 %v1994_v44 }
 0x3b0   : > { %v968_v28 = vsel %vm967_vm13, %v1468_v25, %v1469_v24  ;;  %v916_v53 = vsel %vm588_vm3, %v1498_v37, %v1499_v47  ;;  %v889_v37 = vld [vmem:[%s2238_s16 + $0x8] sm:$0xff] }
 0x3b1   : > { %989 = vmatpush.msrb.mxu3 %v968_v28 }
 0x3b5   : > { %v1978_v30 = vpop.permute.xlu1 %1481 }
 0x3b6   : > { %v1982_v34 = vpop.permute.xlu0 %1491  ;;  %v1484_v35 = vunpack.i.h.bf16 %v1978_v30  ;;  %v1483_v36 = vunpack.i.l.bf16 %v1978_v30 }
 0x3b7   : > { %v1494_v40 = vunpack.i.h.bf16 %v1982_v34  ;;  %v1493_v41 = vunpack.i.l.bf16 %v1982_v34 }
 0x3b8   : > { %v951_v42 = vsel %vm948_vm14, %v1483_v36, %v1484_v35 }
 0x3b9   : > { %990 = vmatpush.msrb.mxu3 %v951_v42  ;;  %v932_v45 = vsel %vm610_vm1, %v1493_v41, %v1494_v40  ;;  %v882_v41 = vld [vmem:[%s2235_s13] sm:$0xff]  ;;  %v885_v42 = vld [vmem:[%s2236_s14 + $0x8] sm:$0xff] }
 0x3bb   : > { %991 = vmatpush.msrb.mxu3 %v949_v43  ;;  %v884_v43 = vld [vmem:[%s2236_s14] sm:$0xff] }
 0x3bd   : > { %v1999_v46 = vpop.permute.xlu1 %1486  ;;  %992 = vmatpush.msrb.mxu3 %v932_v45  ;;  %v883_v45 = vld [vmem:[%s2235_s13 + $0x8] sm:$0xff] }
 0x3be   : > { %v2003_v48 = vpop.permute.xlu0 %1501  ;;  %v1489_v38 = vunpack.i.h.bf16 %v1999_v46  ;;  %v1488_v39 = vunpack.i.l.bf16 %v1999_v46 }
 0x3bf   : > { %v1504_v49 = vunpack.i.h.bf16 %v2003_v48  ;;  %v1503_v51 = vunpack.i.l.bf16 %v2003_v48 }
 0x3c0   : > { %v930_v52 = vsel %vm610_vm1, %v1488_v39, %v1489_v38 }
 0x3c1   : > { %993 = vmatpush.msrb.mxu3 %v930_v52  ;;  %v914_v54 = vsel %vm588_vm3, %v1503_v51, %v1504_v49 }
 0x3c3   : > { %994 = vmatpush.msrb.mxu3 %v916_v53 }
 0x3c5   : > { %995 = vmatpush.msrb.mxu3 %v914_v54  ;;  %v1036_v58 = vpop.permute.xlu1 %1035 }
 0x3c6   : > { %v1050_v12 = vpop.permute.xlu0 %1049 }
 0x3c7   : > { %1327 = vmatpush.msk.msrb.mxu3 %vm1326_vm15, %v1931_v2 }
 0x3c9   : > { %1329 = vmatpush.msk.msrb.mxu3 %vm1326_vm15, %v1924_v61 }
 0x3ca   : > { %1330 = vmatmul.msk.f32.vlgmr.msrb.gmra.mxu3 %vm769_vm11, %v2023_v55 }
 0x3cb   : > { %1350 = vmatpush.msk.msra.mxu3 %vm869_vm12, %v1912_v59  ;;  %v1031_v59 = vpop.permute.xlu2 %1030 }
 0x3cd   : > { %1351 = vmatpush.msk.msra.mxu3 %vm869_vm12, %v1906_v50  ;;  %v1045_v50 = vpop.permute.xlu1 %1044 }
 0x3ce   : > { %v598_v53 = vpop.permute.xlu0 %597 }
 0x3d2   : > { %1331 = vmatmul.msk.f32.gmra.mxu3 %vm769_vm11, %v2037_v56 }
 0x3d3   : > { %v576_v39 = vpop.permute.xlu2 %575 }
 0x3d4   : > { %v579_v10 = vsel %vm577_vm4, %v1421_v20, %v576_v39 }
 0x3d5   : > { %v2107_v57 = vpop.permute.xlu1 %586 }
 0x3d6   : > { %v917_v29 = vsel %vm588_vm3, %v1499_v47, %v2107_v57 }
 0x3da   : > { %1343 = vmatmul.msk.f32.vlgmr.msra.gmra.mxu3 %vm1191_vm5, %v887_v0 }
 0x44d   : > { %v999_v60 = vpop.f32.mrf.mxu3 }
 0x44e   : > { %v1038_v62 = vmul.f32 %v1031_v59, %v999_v60  ;;  %v590_v59 = vsel %vm588_vm3, %v1416_v22, %v2107_v57 }
 0x450   : > { %v2046_v63 = vadd.f32 %v1045_v50, %v1038_v62 }
 0x452   : > { %v1056_v4 = vmax.f32 %v2046_v63, 0.0  ;;  %v881_v63 = vld [vmem:[%s2234_s12 + $0x8] sm:$0xff] }
 0x454   : > { %v1070_v5 = vsel %vm2051_vm10, %v1056_v4, 0.0 }
 0x455   : > { %v1002_v6 = vpop.f32.mrf.mxu3  ;;  %v1505_v7 = vpack.i.bf16 0.0, %v1070_v5  ;;  %v1525_v28 = vpack.i.bf16 %v1070_v5, %v1618_v14 }
 0x456   : > { %v1040_v8 = vmul.f32 %v1036_v58, %v1002_v6  ;;  %v601_v58 = vsel %vm599_vm2, %v1411_v11, %v598_v53  ;;  %v880_v53 = vld [vmem:[%s2234_s12] sm:$0xff] }
 0x457   : > { %1506 = vrot.lane.b32.xlu1 %v1505_v7, %s2281_s7 }
 0x458   : > { %v2061_v18 = vadd.f32 %v1050_v12, %v1040_v8 }
 0x45a   : > { %v1058_v21 = vmax.f32 %v2061_v18, 0.0 }
 0x45c   : > { %v1072_v25 = vsel %vm2051_vm10, %v1058_v21, 0.0 }
 0x45d   : > { %v1515_v33 = vpack.i.bf16 0.0, %v1072_v25  ;;  %v1510_v36 = vpack.i.bf16 %v1072_v25, %v1618_v14 }
 0x45f   : > { %1526 = vrot.lane.b32.xlu1 %v1525_v28, %s2277_s29  ;;  %1516 = vrot.lane.b32.xlu0 %v1515_v33, %s2281_s7 }
 0x460   : > { %1511 = vrot.lane.b32.xlu2 %v1510_v36, %s2277_s29 }
 0x467   : > { %961 = vrot.lane.b32.xlu1 %v1618_v14, %s2281_s7  ;;  %1521 = vrot.lane.b32.xlu0 %v1505_v7, %s2282_s22 }
 0x468   : > { %1531 = vrot.lane.b32.xlu2 %v1515_v33, %s2282_s22 }
 0x46f   : > { %1157 = vperm.xlu1 %1424, %v882_v41   ;;  %1541 = vrot.lane.b32.xlu0 %v1515_v33, %s2278_s23 }
 0x470   : > { %1092 = vrot.lane.b32.xlu2 %v1618_v14, %s2277_s29 }
 0x477   : > { %1174 = vperm.xlu1 %1424, %v885_v42   ;;  %942 = vrot.lane.b32.xlu0 %v1618_v14, %s2282_s22  ;;  %v888_v14 = vld [vmem:[%s2238_s16] sm:$0xff] }
 0x478   : > { %1536 = vrot.lane.b32.xlu2 %v1505_v7, %s2278_s23  ;;  %s1244_s23 = sshll.u32 %s1241_s21, 4  ;;  %s1245_s23 = int_to_ptr.hbm [resolvable:$true] %s1244_s23 }
 0x479   : > { %s1559_s22 = sshra.s32 %s1245_s23, 4  ;;  %s1560_s22 = int_to_ptr.hbm [resolvable:$true] %s1559_s22 }
 0x47a   : > { %s1561_s19 = scalar_lea.hbm %s1560_s22, 16  ;;  %p1566_p0 = scmp.lt.s32.totalorder %s1560_s22, %s2239_s17 }
 0x47b   : > { %p1562_p11 = scmp.ne.s32.totalorder %s1560_s22, %s1561_s19  ;;  %p1567_p1 = scmp.lt.s32.totalorder %s1565_s2, %s1561_s19 }
 0x47d   : > { %p1563_p12 = pnand %p1562_p11, %p1748_p5  ;;  %p1568_p2 = por %p1567_p1, %p1566_p0 }
 0x47f   : > { %1169 = vperm.xlu0 %1423, %v884_v43   ;;  %p1564_p13 = pneg %p1563_p12 }
 0x480   : > { %1162 = vperm.xlu2 %1422, %v883_v45  }
 0x481   : > { %p1569_p3 = pnand %p1568_p2, %p1564_p13 }
 0x487   : > { %1188 = vperm.xlu0 %1423, %v889_v37  }
 0x488   : > { %1183 = vperm.xlu2 %1422, %v888_v14  }
 0x4ba   : > { %v1512_v51 = vpop.permute.xlu2 %1511 }
 0x4bb   : > { %v2101_v52 = vunpack.i.l.bf16 %v1512_v51  ;;  %v1514_v28 = vunpack.i.h.bf16 %v1512_v51 }
 0x4bd   : > { %v612_v54 = vsel %vm610_vm1, %v1406_v13, %v2101_v52  ;;  %v933_v30 = vsel %vm610_vm1, %v1494_v40, %v2101_v52 }
 0x4be   : > { %656 = vmatpush.msra.mxu1 %v612_v54 }
 0x4c0   : > { %657 = vmatpush.msra.mxu1 %v601_v58 }
 0x4c2   : > { %658 = vmatpush.msra.mxu1 %v590_v59  ;;  %v1532_v11 = vpop.permute.xlu2 %1531 }
 0x4c3   : > { %v1534_v50 = vunpack.i.h.bf16 %v1532_v11  ;;  %v1533_v20 = vunpack.i.l.bf16 %v1532_v11 }
 0x4c4   : > { %659 = vmatpush.msra.mxu1 %v579_v10 }
 0x4c6   : > { %1317 = vmatpush.msk.msra.mxu1 %vm565_vm0, %v1763_v1 }
 0x4c7   : > { %1318 = vmatmul.msk.f32.vlgmr.msra.gmra.mxu1 %vm615_vm6, %v1817_v26  ;;  %v1111_v26 = vsel %vm948_vm14, %v1533_v20, %v1534_v50 }
 0x4c9   : > { %v1507_v9 = vpop.permute.xlu1 %1506 }
 0x4ca   : > { %v1509_v22 = vunpack.i.h.bf16 %v1507_v9  ;;  %v1508_v60 = vunpack.i.l.bf16 %v1507_v9  ;;  %v1093_v5 = vpop.permute.xlu2 %1092 }
 0x4cc   : > { %v1122_v1 = vsel %vm967_vm13, %v1508_v60, %v1509_v22 }
 0x4cf   : > { %1319 = vmatmul.msk.f32.gmra.mxu1 %vm615_vm6, %v1825_v27 }
 0x4d1   : > { %v1527_v13 = vpop.permute.xlu1 %1526  ;;  %v1517_v19 = vpop.permute.xlu0 %1516 }
 0x4d2   : > { %v1519_v62 = vunpack.i.h.bf16 %v1517_v19  ;;  %v1518_v17 = vunpack.i.l.bf16 %v1517_v19  ;;  %v1528_v27 = vunpack.i.l.bf16 %v1527_v13  ;;  %v1529_v33 = vunpack.i.h.bf16 %v1527_v13  ;;  %v1537_v43 = vpop.permute.xlu2 %1536 }
 0x4d3   : > { %v1538_v37 = vunpack.i.l.bf16 %v1537_v43 }
 0x4d4   : > { %v1123_v0 = vsel %vm967_vm13, %v1518_v17, %v1519_v62  ;;  %v1099_v42 = vsel %vm610_vm1, %v1514_v28, %v1528_v27  ;;  %v1098_v45 = vsel %vm610_vm1, %v1529_v33, %v1093_v5 }
 0x4d5   : > { %1138 = vmatpush.msrb.mxu1 %v1123_v0 }
 0x4d7   : > { %1139 = vmatpush.msrb.mxu1 %v1122_v1 }
 0x4d9   : > { %v962_v6 = vpop.permute.xlu1 %961  ;;  %v1522_v7 = vpop.permute.xlu0 %1521  ;;  %1140 = vmatpush.msrb.mxu1 %v1111_v26 }
 0x4da   : > { %v1524_v8 = vunpack.i.h.bf16 %v1522_v7  ;;  %v1523_v12 = vunpack.i.l.bf16 %v1522_v7  ;;  %v971_v25 = vsel %vm967_vm13, %v1474_v16, %v962_v6  ;;  %v969_v36 = vsel %vm967_vm13, %v1469_v24, %v962_v6  ;;  %v1163_v44 = vpop.permute.xlu2 %1162 }
 0x4db   : > { %1011 = vmatpush.msrb.mxu0 %v971_v25  ;;  %v1539_v16 = vunpack.i.h.bf16 %v1537_v43 }
 0x4dc   : > { %v1110_v41 = vsel %vm948_vm14, %v1523_v12, %v1524_v8 }
 0x4dd   : > { %1012 = vmatpush.msrb.mxu0 %v969_v36  ;;  %1141 = vmatpush.msrb.mxu1 %v1110_v41  ;;  %v1086_v24 = vsel %vm588_vm3, %v1538_v37, %v1539_v16 }
 0x4df   : > { %1142 = vmatpush.msrb.mxu1 %v1099_v42 }
 0x4e1   : > { %v1542_v15 = vpop.permute.xlu0 %1541  ;;  %1143 = vmatpush.msrb.mxu1 %v1098_v45  ;;  %v1158_v46 = vpop.permute.xlu1 %1157 }
 0x4e2   : > { %v1544_v14 = vunpack.i.h.bf16 %v1542_v15  ;;  %v1543_v39 = vunpack.i.l.bf16 %v1542_v15  ;;  %v1184_v3 = vpop.permute.xlu2 %1183 }
 0x4e4   : > { %v1087_v23 = vsel %vm588_vm3, %v1543_v39, %v1544_v14 }
 0x4e5   : > { %1144 = vmatpush.msrb.mxu1 %v1087_v23 }
 0x4e7   : > { %1145 = vmatpush.msrb.mxu1 %v1086_v24 }
 0x4e9   : > { %v943_v51 = vpop.permute.xlu0 %942  ;;  %1336 = vmatpush.msk.msrb.mxu1 %vm2051_vm10, %v1058_v21  ;;  %v1175_v58 = vpop.permute.xlu1 %1174 }
 0x4ea   : > { %v952_v54 = vsel %vm948_vm14, %v1484_v35, %v943_v51  ;;  %v950_v18 = vsel %vm948_vm14, %v1479_v31, %v943_v51  ;;  %v931_v35 = vsel %vm610_vm1, %v1489_v38, %v2101_v52  ;;  %v915_v31 = vsel %vm588_vm3, %v1504_v49, %v2107_v57  ;;  %v1215_v49 = vpop.f32.mrf.mxu2  ;;  %v1218_v52 = vpop.f32.mrf.mxu3 }
 0x4eb   : > { %1013 = vmatpush.msrb.mxu0 %v952_v54  ;;  %1337 = vmatpush.msk.msrb.mxu1 %vm2051_vm10, %v1056_v4  ;;  %v1216_v4 = vadd.f32 %v1215_v49, %v1184_v3 }
 0x4ec   : > { %1338 = vmatmul.msk.f32.vlgmr.msrb.gmra.mxu1 %vm769_vm11, %v880_v53 }
 0x4ed   : > { %1014 = vmatpush.msrb.mxu0 %v950_v18 }
 0x4ef   : > { %1015 = vmatpush.msrb.mxu0 %v933_v30 }
 0x4f1   : > { %1016 = vmatpush.msrb.mxu0 %v931_v35  ;;  %v1170_v47 = vpop.permute.xlu0 %1169 }
 0x4f3   : > { %1017 = vmatpush.msrb.mxu0 %v917_v29 }
 0x4f4   : > { %1339 = vmatmul.msk.f32.gmra.mxu1 %vm769_vm11, %v881_v63 }
 0x4f5   : > { %1018 = vmatpush.msrb.mxu0 %v915_v31 }
 0x4f7   : > { %1332 = vmatpush.msk.msrb.mxu0 %vm835_vm7, %v1931_v2 }
 0x4f9   : > { %1333 = vmatpush.msk.msrb.mxu0 %vm835_vm7, %v1924_v61  ;;  %v1189_v59 = vpop.permute.xlu0 %1188 }
 0x4fa   : > { %1334 = vmatmul.msk.f32.vlgmr.msrb.gmra.mxu0 %vm769_vm11, %v2023_v55  ;;  %v1219_v11 = vadd.f32 %v1218_v52, %v1189_v59 }
 0x502   : > { %1335 = vmatmul.msk.f32.gmra.mxu0 %vm769_vm11, %v2037_v56 }
 0x544   : > { %v662_v34 = vpop.f32.mrf.mxu1 }
 0x54c   : > { %v665_v40 = vpop.f32.mrf.mxu1 }
 0x569   : > { %v1149_v48 = vpop.f32.mrf.mxu1 }
 0x56a   : > { %v1165_v38 = vmul.f32 %v1158_v46, %v1149_v48 }
 0x56c   : > { %v1177_v2 = vadd.f32 %v1170_v47, %v1165_v38 }
 0x56e   : > { %v1179_v61 = vmax.f32 %v1177_v2, 0.0 }
 0x570   : > { %v1221_v21 = vadd.f32 %v1216_v4, %v1179_v61 }
 0x571   : > { %v1152_v55 = vpop.f32.mrf.mxu1 }
 0x572   : > { %v1223_v57 = vmax.f32 %v1221_v21, 0.0  ;;  %v1166_v56 = vmul.f32 %v1163_v44, %v1152_v55 }
 0x574   : > { %v1225_v10 = vsel %vm869_vm12, %v1223_v57, 0.0  ;;  %v1178_v9 = vadd.f32 %v1175_v58, %v1166_v56 }
 0x575   : > { %1227 = vst [vmem:[%s539_s3] sm:$0xff] %v1225_v10 }
 0x576   : > { %v1180_v13 = vmax.f32 %v1178_v9, 0.0 }
 0x577   : > { %v1022_v19 = vpop.f32.mrf.mxu0 }
 0x578   : > { %v1222_v22 = vadd.f32 %v1219_v11, %v1180_v13 }
 0x57a   : > { %v1224_v60 = vmax.f32 %v1222_v22, 0.0 }
 0x57c   : > { %v1226_v62 = vsel %vm869_vm12, %v1224_v60, 0.0 }
 0x57d   : > { %1228 = vst [vmem:[%s539_s3 + $0x8] sm:$0xff] %v1226_v62 }
 0x57e   : > { %1572 = shalt.err (!%p1569_p3)
}
 0x57f   : > { %s1619_s0 = smov 128   ;;  %s2283_s3 = smov 8   ;;  %v1025_v32 = vpop.f32.mrf.mxu0 }
 0x580   : > { %1352 = dma.vmem_to_hbm [thread:$0]  (%p1748_p5), %s1243_s18, 256, %s1245_s23, %s1230_s28, %s1619_s0, %s1619_s0, %s2283_s3  }
 0x581 PF: > { %p1358_p4 = scmp.ge.s32.totalorder %s1607_s27, 2  ;;  %s1259_s21 = sand.u32 1, %s1595_s24  }
 0x582   : > { %s1260_s22 = scalar_lea.sflag [#allocation3], %s1259_s21 }
 0x583   : > { %p1355_p7 = pnand %p1358_p4, %p1752_p6 }
 0x585   : > { %p1356_p8 = pneg %p1355_p7 }
 0x587   : > { %1590 = dma.done.wait (%p1356_p8), %s1260_s22, 256  }
 0x588   : > { %1592 = vsyncadd (%p1356_p8), %s1260_s22, 4294967040  ;;  %s2284_s27 = sld [smem:[#allocation6_spill]]  ;;  %s2287_s24 = smov %s1599_s25 }
 0x589   : > { %s2285_s19 = sld [smem:[#allocation5_spill]] }
 0x58a   : > { %s2286_s26 = sld [smem:[#allocation7_spill]] }
 0x58e   : > { %p27_p9 = scmp.ge.s32.totalorder %s2284_s27, 4  }
 0x58f   : > { %s2288_s25 = smov %s2285_s19 }
 0x590   :  { %29 = sbr.rel (!%p27_p9) target bundleno = 9 (0x9), region = 123 }
 0x595   :  { %1266 = vsyncpa [#allocation3], 1 }
 0x596   :  { %1268 = vsyncpa [#allocation3 + $0x1], 1 }

</bundles_post_ra>
